<compile_context>
chip_gen: v5e
topology: v5e:2x2
jax: 0.10.0
libtpu: 0.0.40
codegen_flags: <defaults>
</compile_context>

<pallas_src>
import functools

import jax
import jax.numpy as jnp
from jax.experimental import pallas as pl
from jax.experimental.pallas import tpu as pltpu


def _kaf_kernel(x_ref, alpha_ref, o_ref, *, gamma, dict_vals, n_acc=4):
    # x_ref:     (TB, W)  folded activation tile (lane-dense, W = fold * N)
    # alpha_ref: (D,  W)  coefficients; row j = alpha[:, j] tiled across the fold
    # o_ref:     (TB, W)  output tile
    x = x_ref[...].astype(jnp.float32)
    alpha = alpha_ref[...].astype(jnp.float32)

    neg_gamma = -float(gamma)
    D = len(dict_vals)
    n_acc = max(1, min(n_acc, D))
    accs = [jnp.zeros_like(x) for _ in range(n_acc)]

    # Fully unrolled: the LLO scheduler can overlap the EUP exp of iteration j
    # with the VALU sub/mul/add of neighbouring iterations; independent partial
    # accumulators break the serial accumulate dependency chain.
    for j, d_j in enumerate(dict_vals):
        diff = x - d_j                         # d_j is a scalar immediate
        k = jnp.exp(neg_gamma * (diff * diff))
        accs[j % n_acc] = accs[j % n_acc] + k * alpha[j][None, :]

    y = accs[0]
    for a in accs[1:]:
        y = y + a
    o_ref[...] = y.astype(o_ref.dtype)


def _pick_lane_fold(B, N):
    """Smallest k dividing B such that k*N is a multiple of 128 (lane-dense)."""
    for k in range(1, B + 1):
        if B % k == 0 and (k * N) % 128 == 0:
            return k
    return 1


def _pick_tile_rows(B_fold, W, max_elems_per_buf=512 * 1024, max_rows=512):
    """Largest row tile: the full array if it is small, otherwise a divisor of
    B_fold that is a multiple of 8 and fits the per-buffer VMEM budget."""
    cap = max(1, min(max_rows, max_elems_per_buf // max(W, 1)))
    if B_fold <= cap:
        return B_fold
    for t in range(min(cap, B_fold), 0, -1):
        if B_fold % t == 0 and t % 8 == 0:
            return t
    return B_fold  # fallback: single block


def kaf_forward(x, dict_vals, alpha, gamma):
    """x: (B, N) f32; dict_vals: (D,) f32; alpha: (N, D) f32; returns (B, N)."""
    B, N = x.shape
    D = dict_vals.shape[0]
    assert alpha.shape == (N, D)

    # Lane-dense fold: (B, N) -> (B/k, k*N) with k*N a multiple of 128.
    k = _pick_lane_fold(B, N)
    W = k * N
    B_fold = B // k
    x_fold = x.reshape(B_fold, W)

    # alpha row j of length W = alpha[:, j] repeated k times (matches the fold).
    alpha_t = jnp.tile(alpha, (k, 1)).T          # (D, W), contiguous per-d_j rows

    tile_b = _pick_tile_rows(B_fold, W)
    grid = (B_fold // tile_b,)

    # Bake the compile-time dictionary and gamma into the kernel.
    kernel = functools.partial(
        _kaf_kernel,
        gamma=float(gamma),
        dict_vals=tuple(float(d) for d in jax.device_get(dict_vals)),
    )

    # Explicit VMEM budget: double-buffered x + out tiles plus resident alpha.
    tile_bytes = tile_b * W * 4
    need = 4 * tile_bytes + 2 * D * W * 4 + (1 << 20)
    vmem_limit = int(min(96 << 20, max(16 << 20, 2 * need)))

    out_fold = pl.pallas_call(
        kernel,
        out_shape=jax.ShapeDtypeStruct((B_fold, W), x.dtype),
        grid_spec=pltpu.PrefetchScalarGridSpec(
            num_scalar_prefetch=0,
            grid=grid,
            in_specs=[
                pl.BlockSpec((tile_b, W), lambda i: (i, 0)),   # x tile
                pl.BlockSpec((D, W), lambda i: (0, 0)),        # alpha (resident)
            ],
            out_specs=pl.BlockSpec((tile_b, W), lambda i: (i, 0)),
        ),
        compiler_params=pltpu.CompilerParams(
            dimension_semantics=("parallel",),
            vmem_limit_bytes=vmem_limit,
        ),
    )(x_fold, alpha_t)

    return out_fold.reshape(B, N)


def kaf_reference(x, dict_vals, alpha, gamma):
    # Pure-JAX reference matching the PyTorch forward exactly.
    k = jnp.exp(-gamma * (x[..., None] - dict_vals[None, None, :]) ** 2)
    return jnp.sum(k * alpha[None, :, :], axis=-1)


if __name__ == "__main__":
    # Module config (mirrors KAF(num_parameters=N, D=20, boundary=3.0)).
    N = 32          # num_parameters (neurons in the layer)
    D = 20          # dictionary size
    boundary = 3.0
    B = 16          # batch size

    # Dictionary and gamma exactly as in __init__.
    dict_vals = jnp.linspace(-boundary, boundary, D, dtype=jnp.float32)
    interval = float(dict_vals[1] - dict_vals[0])
    sigma = 2.0 * interval
    gamma = float(0.5 / (sigma ** 2))

    # Deterministic parameter / input init (init_fcn=None path: normal_(std=0.3)).
    key = jax.random.PRNGKey(0)
    k_alpha, k_x = jax.random.split(key)
    alpha = (0.3 * jax.random.normal(k_alpha, (N, D))).astype(jnp.float32)
    x = jax.random.normal(k_x, (B, N), dtype=jnp.float32)

    y = kaf_forward(x, dict_vals, alpha, gamma)
    y = jax.block_until_ready(y)

    y_ref = kaf_reference(x, dict_vals, alpha, gamma)
    assert y.shape == (B, N)
    assert jnp.allclose(y, y_ref, atol=1e-5, rtol=1e-5), "mismatch vs reference"

    print("KERNEL_OK")
</pallas_src>

<mosaic_0001>
module attributes {stable_mosaic.version = 11 : i64} {
  func.func @_kaf_kernel(%arg0: i32, %arg1: memref<4x128xf32, #tpu.memory_space<vmem>>, %arg2: memref<20x128xf32, #tpu.memory_space<vmem>>, %arg3: memref<4x128xf32, #tpu.memory_space<vmem>>) attributes {dimension_semantics = [#tpu.dimension_semantics<parallel>], iteration_bounds = array<i64: 1>, scalar_prefetch = 0 : i64, scratch_operands = 0 : i64, tpu.core_type = #tpu.core_type<tc>, window_params = [{transform_indices = @transform_0, window_bounds = array<i64: 4, 128>}, {pipeline_mode = #tpu.pipeline_mode<synchronous>, transform_indices = @transform_1, window_bounds = array<i64: 20, 128>}, {transform_indices = @transform_2, window_bounds = array<i64: 4, 128>}]} {
    %c0 = arith.constant 0 : index
    %c0_0 = arith.constant 0 : index
    %0 = vector.load %arg1[%c0, %c0_0] : memref<4x128xf32, #tpu.memory_space<vmem>>, vector<4x128xf32>
    %c0_1 = arith.constant 0 : index
    %c0_2 = arith.constant 0 : index
    %1 = vector.load %arg2[%c0_1, %c0_2] : memref<20x128xf32, #tpu.memory_space<vmem>>, vector<20x128xf32>
    %cst = arith.constant 0.000000e+00 : f32
    %2 = vector.broadcast %cst : f32 to vector<4x128xf32>
    %cst_3 = arith.constant 0.000000e+00 : f32
    %3 = vector.broadcast %cst_3 : f32 to vector<4x128xf32>
    %cst_4 = arith.constant 0.000000e+00 : f32
    %4 = vector.broadcast %cst_4 : f32 to vector<4x128xf32>
    %cst_5 = arith.constant 0.000000e+00 : f32
    %5 = vector.broadcast %cst_5 : f32 to vector<4x128xf32>
    %cst_6 = arith.constant -3.000000e+00 : f32
    %6 = vector.broadcast %cst_6 : f32 to vector<4x128xf32>
    %7 = arith.subf %0, %6 : vector<4x128xf32>
    %8 = arith.mulf %7, %7 : vector<4x128xf32>
    %cst_7 = arith.constant -1.25347233 : f32
    %9 = vector.broadcast %cst_7 : f32 to vector<4x128xf32>
    %10 = arith.mulf %9, %8 : vector<4x128xf32>
    %11 = math.exp %10 : vector<4x128xf32>
    %12 = vector.extract_strided_slice %1 {offsets = [0, 0], sizes = [1, 128], strides = [1, 1]} : vector<20x128xf32> to vector<1x128xf32>
    %13 = vector.shape_cast %12 : vector<1x128xf32> to vector<128xf32>
    %14 = vector.shape_cast %13 : vector<128xf32> to vector<1x128xf32>
    %15 = vector.broadcast %14 : vector<1x128xf32> to vector<4x128xf32>
    %16 = arith.mulf %11, %15 : vector<4x128xf32>
    %17 = arith.addf %2, %16 : vector<4x128xf32>
    %cst_8 = arith.constant -2.68421054 : f32
    %18 = vector.broadcast %cst_8 : f32 to vector<4x128xf32>
    %19 = arith.subf %0, %18 : vector<4x128xf32>
    %20 = arith.mulf %19, %19 : vector<4x128xf32>
    %cst_9 = arith.constant -1.25347233 : f32
    %21 = vector.broadcast %cst_9 : f32 to vector<4x128xf32>
    %22 = arith.mulf %21, %20 : vector<4x128xf32>
    %23 = math.exp %22 : vector<4x128xf32>
    %24 = vector.extract_strided_slice %1 {offsets = [1, 0], sizes = [1, 128], strides = [1, 1]} : vector<20x128xf32> to vector<1x128xf32>
    %25 = vector.shape_cast %24 : vector<1x128xf32> to vector<128xf32>
    %26 = vector.shape_cast %25 : vector<128xf32> to vector<1x128xf32>
    %27 = vector.broadcast %26 : vector<1x128xf32> to vector<4x128xf32>
    %28 = arith.mulf %23, %27 : vector<4x128xf32>
    %29 = arith.addf %3, %28 : vector<4x128xf32>
    %cst_10 = arith.constant -2.36842108 : f32
    %30 = vector.broadcast %cst_10 : f32 to vector<4x128xf32>
    %31 = arith.subf %0, %30 : vector<4x128xf32>
    %32 = arith.mulf %31, %31 : vector<4x128xf32>
    %cst_11 = arith.constant -1.25347233 : f32
    %33 = vector.broadcast %cst_11 : f32 to vector<4x128xf32>
    %34 = arith.mulf %33, %32 : vector<4x128xf32>
    %35 = math.exp %34 : vector<4x128xf32>
    %36 = vector.extract_strided_slice %1 {offsets = [2, 0], sizes = [1, 128], strides = [1, 1]} : vector<20x128xf32> to vector<1x128xf32>
    %37 = vector.shape_cast %36 : vector<1x128xf32> to vector<128xf32>
    %38 = vector.shape_cast %37 : vector<128xf32> to vector<1x128xf32>
    %39 = vector.broadcast %38 : vector<1x128xf32> to vector<4x128xf32>
    %40 = arith.mulf %35, %39 : vector<4x128xf32>
    %41 = arith.addf %4, %40 : vector<4x128xf32>
    %cst_12 = arith.constant -2.05263138 : f32
    %42 = vector.broadcast %cst_12 : f32 to vector<4x128xf32>
    %43 = arith.subf %0, %42 : vector<4x128xf32>
    %44 = arith.mulf %43, %43 : vector<4x128xf32>
    %cst_13 = arith.constant -1.25347233 : f32
    %45 = vector.broadcast %cst_13 : f32 to vector<4x128xf32>
    %46 = arith.mulf %45, %44 : vector<4x128xf32>
    %47 = math.exp %46 : vector<4x128xf32>
    %48 = vector.extract_strided_slice %1 {offsets = [3, 0], sizes = [1, 128], strides = [1, 1]} : vector<20x128xf32> to vector<1x128xf32>
    %49 = vector.shape_cast %48 : vector<1x128xf32> to vector<128xf32>
    %50 = vector.shape_cast %49 : vector<128xf32> to vector<1x128xf32>
    %51 = vector.broadcast %50 : vector<1x128xf32> to vector<4x128xf32>
    %52 = arith.mulf %47, %51 : vector<4x128xf32>
    %53 = arith.addf %5, %52 : vector<4x128xf32>
    %cst_14 = arith.constant -1.73684216 : f32
    %54 = vector.broadcast %cst_14 : f32 to vector<4x128xf32>
    %55 = arith.subf %0, %54 : vector<4x128xf32>
    %56 = arith.mulf %55, %55 : vector<4x128xf32>
    %cst_15 = arith.constant -1.25347233 : f32
    %57 = vector.broadcast %cst_15 : f32 to vector<4x128xf32>
    %58 = arith.mulf %57, %56 : vector<4x128xf32>
    %59 = math.exp %58 : vector<4x128xf32>
    %60 = vector.extract_strided_slice %1 {offsets = [4, 0], sizes = [1, 128], strides = [1, 1]} : vector<20x128xf32> to vector<1x128xf32>
    %61 = vector.shape_cast %60 : vector<1x128xf32> to vector<128xf32>
    %62 = vector.shape_cast %61 : vector<128xf32> to vector<1x128xf32>
    %63 = vector.broadcast %62 : vector<1x128xf32> to vector<4x128xf32>
    %64 = arith.mulf %59, %63 : vector<4x128xf32>
    %65 = arith.addf %17, %64 : vector<4x128xf32>
    %cst_16 = arith.constant -1.42105258 : f32
    %66 = vector.broadcast %cst_16 : f32 to vector<4x128xf32>
    %67 = arith.subf %0, %66 : vector<4x128xf32>
    %68 = arith.mulf %67, %67 : vector<4x128xf32>
    %cst_17 = arith.constant -1.25347233 : f32
    %69 = vector.broadcast %cst_17 : f32 to vector<4x128xf32>
    %70 = arith.mulf %69, %68 : vector<4x128xf32>
    %71 = math.exp %70 : vector<4x128xf32>
    %72 = vector.extract_strided_slice %1 {offsets = [5, 0], sizes = [1, 128], strides = [1, 1]} : vector<20x128xf32> to vector<1x128xf32>
    %73 = vector.shape_cast %72 : vector<1x128xf32> to vector<128xf32>
    %74 = vector.shape_cast %73 : vector<128xf32> to vector<1x128xf32>
    %75 = vector.broadcast %74 : vector<1x128xf32> to vector<4x128xf32>
    %76 = arith.mulf %71, %75 : vector<4x128xf32>
    %77 = arith.addf %29, %76 : vector<4x128xf32>
    %cst_18 = arith.constant -1.10526323 : f32
    %78 = vector.broadcast %cst_18 : f32 to vector<4x128xf32>
    %79 = arith.subf %0, %78 : vector<4x128xf32>
    %80 = arith.mulf %79, %79 : vector<4x128xf32>
    %cst_19 = arith.constant -1.25347233 : f32
    %81 = vector.broadcast %cst_19 : f32 to vector<4x128xf32>
    %82 = arith.mulf %81, %80 : vector<4x128xf32>
    %83 = math.exp %82 : vector<4x128xf32>
    %84 = vector.extract_strided_slice %1 {offsets = [6, 0], sizes = [1, 128], strides = [1, 1]} : vector<20x128xf32> to vector<1x128xf32>
    %85 = vector.shape_cast %84 : vector<1x128xf32> to vector<128xf32>
    %86 = vector.shape_cast %85 : vector<128xf32> to vector<1x128xf32>
    %87 = vector.broadcast %86 : vector<1x128xf32> to vector<4x128xf32>
    %88 = arith.mulf %83, %87 : vector<4x128xf32>
    %89 = arith.addf %41, %88 : vector<4x128xf32>
    %cst_20 = arith.constant -0.789473652 : f32
    %90 = vector.broadcast %cst_20 : f32 to vector<4x128xf32>
    %91 = arith.subf %0, %90 : vector<4x128xf32>
    %92 = arith.mulf %91, %91 : vector<4x128xf32>
    %cst_21 = arith.constant -1.25347233 : f32
    %93 = vector.broadcast %cst_21 : f32 to vector<4x128xf32>
    %94 = arith.mulf %93, %92 : vector<4x128xf32>
    %95 = math.exp %94 : vector<4x128xf32>
    %96 = vector.extract_strided_slice %1 {offsets = [7, 0], sizes = [1, 128], strides = [1, 1]} : vector<20x128xf32> to vector<1x128xf32>
    %97 = vector.shape_cast %96 : vector<1x128xf32> to vector<128xf32>
    %98 = vector.shape_cast %97 : vector<128xf32> to vector<1x128xf32>
    %99 = vector.broadcast %98 : vector<1x128xf32> to vector<4x128xf32>
    %100 = arith.mulf %95, %99 : vector<4x128xf32>
    %101 = arith.addf %53, %100 : vector<4x128xf32>
    %cst_22 = arith.constant -0.473684311 : f32
    %102 = vector.broadcast %cst_22 : f32 to vector<4x128xf32>
    %103 = arith.subf %0, %102 : vector<4x128xf32>
    %104 = arith.mulf %103, %103 : vector<4x128xf32>
    %cst_23 = arith.constant -1.25347233 : f32
    %105 = vector.broadcast %cst_23 : f32 to vector<4x128xf32>
    %106 = arith.mulf %105, %104 : vector<4x128xf32>
    %107 = math.exp %106 : vector<4x128xf32>
    %108 = vector.extract_strided_slice %1 {offsets = [8, 0], sizes = [1, 128], strides = [1, 1]} : vector<20x128xf32> to vector<1x128xf32>
    %109 = vector.shape_cast %108 : vector<1x128xf32> to vector<128xf32>
    %110 = vector.shape_cast %109 : vector<128xf32> to vector<1x128xf32>
    %111 = vector.broadcast %110 : vector<1x128xf32> to vector<4x128xf32>
    %112 = arith.mulf %107, %111 : vector<4x128xf32>
    %113 = arith.addf %65, %112 : vector<4x128xf32>
    %cst_24 = arith.constant -0.15789485 : f32
    %114 = vector.broadcast %cst_24 : f32 to vector<4x128xf32>
    %115 = arith.subf %0, %114 : vector<4x128xf32>
    %116 = arith.mulf %115, %115 : vector<4x128xf32>
    %cst_25 = arith.constant -1.25347233 : f32
    %117 = vector.broadcast %cst_25 : f32 to vector<4x128xf32>
    %118 = arith.mulf %117, %116 : vector<4x128xf32>
    %119 = math.exp %118 : vector<4x128xf32>
    %120 = vector.extract_strided_slice %1 {offsets = [9, 0], sizes = [1, 128], strides = [1, 1]} : vector<20x128xf32> to vector<1x128xf32>
    %121 = vector.shape_cast %120 : vector<1x128xf32> to vector<128xf32>
    %122 = vector.shape_cast %121 : vector<128xf32> to vector<1x128xf32>
    %123 = vector.broadcast %122 : vector<1x128xf32> to vector<4x128xf32>
    %124 = arith.mulf %119, %123 : vector<4x128xf32>
    %125 = arith.addf %77, %124 : vector<4x128xf32>
    %cst_26 = arith.constant 0.157894731 : f32
    %126 = vector.broadcast %cst_26 : f32 to vector<4x128xf32>
    %127 = arith.subf %0, %126 : vector<4x128xf32>
    %128 = arith.mulf %127, %127 : vector<4x128xf32>
    %cst_27 = arith.constant -1.25347233 : f32
    %129 = vector.broadcast %cst_27 : f32 to vector<4x128xf32>
    %130 = arith.mulf %129, %128 : vector<4x128xf32>
    %131 = math.exp %130 : vector<4x128xf32>
    %132 = vector.extract_strided_slice %1 {offsets = [10, 0], sizes = [1, 128], strides = [1, 1]} : vector<20x128xf32> to vector<1x128xf32>
    %133 = vector.shape_cast %132 : vector<1x128xf32> to vector<128xf32>
    %134 = vector.shape_cast %133 : vector<128xf32> to vector<1x128xf32>
    %135 = vector.broadcast %134 : vector<1x128xf32> to vector<4x128xf32>
    %136 = arith.mulf %131, %135 : vector<4x128xf32>
    %137 = arith.addf %89, %136 : vector<4x128xf32>
    %cst_28 = arith.constant 0.473684192 : f32
    %138 = vector.broadcast %cst_28 : f32 to vector<4x128xf32>
    %139 = arith.subf %0, %138 : vector<4x128xf32>
    %140 = arith.mulf %139, %139 : vector<4x128xf32>
    %cst_29 = arith.constant -1.25347233 : f32
    %141 = vector.broadcast %cst_29 : f32 to vector<4x128xf32>
    %142 = arith.mulf %141, %140 : vector<4x128xf32>
    %143 = math.exp %142 : vector<4x128xf32>
    %144 = vector.extract_strided_slice %1 {offsets = [11, 0], sizes = [1, 128], strides = [1, 1]} : vector<20x128xf32> to vector<1x128xf32>
    %145 = vector.shape_cast %144 : vector<1x128xf32> to vector<128xf32>
    %146 = vector.shape_cast %145 : vector<128xf32> to vector<1x128xf32>
    %147 = vector.broadcast %146 : vector<1x128xf32> to vector<4x128xf32>
    %148 = arith.mulf %143, %147 : vector<4x128xf32>
    %149 = arith.addf %101, %148 : vector<4x128xf32>
    %cst_30 = arith.constant 0.789473533 : f32
    %150 = vector.broadcast %cst_30 : f32 to vector<4x128xf32>
    %151 = arith.subf %0, %150 : vector<4x128xf32>
    %152 = arith.mulf %151, %151 : vector<4x128xf32>
    %cst_31 = arith.constant -1.25347233 : f32
    %153 = vector.broadcast %cst_31 : f32 to vector<4x128xf32>
    %154 = arith.mulf %153, %152 : vector<4x128xf32>
    %155 = math.exp %154 : vector<4x128xf32>
    %156 = vector.extract_strided_slice %1 {offsets = [12, 0], sizes = [1, 128], strides = [1, 1]} : vector<20x128xf32> to vector<1x128xf32>
    %157 = vector.shape_cast %156 : vector<1x128xf32> to vector<128xf32>
    %158 = vector.shape_cast %157 : vector<128xf32> to vector<1x128xf32>
    %159 = vector.broadcast %158 : vector<1x128xf32> to vector<4x128xf32>
    %160 = arith.mulf %155, %159 : vector<4x128xf32>
    %161 = arith.addf %113, %160 : vector<4x128xf32>
    %cst_32 = arith.constant 1.10526311 : f32
    %162 = vector.broadcast %cst_32 : f32 to vector<4x128xf32>
    %163 = arith.subf %0, %162 : vector<4x128xf32>
    %164 = arith.mulf %163, %163 : vector<4x128xf32>
    %cst_33 = arith.constant -1.25347233 : f32
    %165 = vector.broadcast %cst_33 : f32 to vector<4x128xf32>
    %166 = arith.mulf %165, %164 : vector<4x128xf32>
    %167 = math.exp %166 : vector<4x128xf32>
    %168 = vector.extract_strided_slice %1 {offsets = [13, 0], sizes = [1, 128], strides = [1, 1]} : vector<20x128xf32> to vector<1x128xf32>
    %169 = vector.shape_cast %168 : vector<1x128xf32> to vector<128xf32>
    %170 = vector.shape_cast %169 : vector<128xf32> to vector<1x128xf32>
    %171 = vector.broadcast %170 : vector<1x128xf32> to vector<4x128xf32>
    %172 = arith.mulf %167, %171 : vector<4x128xf32>
    %173 = arith.addf %125, %172 : vector<4x128xf32>
    %cst_34 = arith.constant 1.42105246 : f32
    %174 = vector.broadcast %cst_34 : f32 to vector<4x128xf32>
    %175 = arith.subf %0, %174 : vector<4x128xf32>
    %176 = arith.mulf %175, %175 : vector<4x128xf32>
    %cst_35 = arith.constant -1.25347233 : f32
    %177 = vector.broadcast %cst_35 : f32 to vector<4x128xf32>
    %178 = arith.mulf %177, %176 : vector<4x128xf32>
    %179 = math.exp %178 : vector<4x128xf32>
    %180 = vector.extract_strided_slice %1 {offsets = [14, 0], sizes = [1, 128], strides = [1, 1]} : vector<20x128xf32> to vector<1x128xf32>
    %181 = vector.shape_cast %180 : vector<1x128xf32> to vector<128xf32>
    %182 = vector.shape_cast %181 : vector<128xf32> to vector<1x128xf32>
    %183 = vector.broadcast %182 : vector<1x128xf32> to vector<4x128xf32>
    %184 = arith.mulf %179, %183 : vector<4x128xf32>
    %185 = arith.addf %137, %184 : vector<4x128xf32>
    %cst_36 = arith.constant 1.73684216 : f32
    %186 = vector.broadcast %cst_36 : f32 to vector<4x128xf32>
    %187 = arith.subf %0, %186 : vector<4x128xf32>
    %188 = arith.mulf %187, %187 : vector<4x128xf32>
    %cst_37 = arith.constant -1.25347233 : f32
    %189 = vector.broadcast %cst_37 : f32 to vector<4x128xf32>
    %190 = arith.mulf %189, %188 : vector<4x128xf32>
    %191 = math.exp %190 : vector<4x128xf32>
    %192 = vector.extract_strided_slice %1 {offsets = [15, 0], sizes = [1, 128], strides = [1, 1]} : vector<20x128xf32> to vector<1x128xf32>
    %193 = vector.shape_cast %192 : vector<1x128xf32> to vector<128xf32>
    %194 = vector.shape_cast %193 : vector<128xf32> to vector<1x128xf32>
    %195 = vector.broadcast %194 : vector<1x128xf32> to vector<4x128xf32>
    %196 = arith.mulf %191, %195 : vector<4x128xf32>
    %197 = arith.addf %149, %196 : vector<4x128xf32>
    %cst_38 = arith.constant 2.05263138 : f32
    %198 = vector.broadcast %cst_38 : f32 to vector<4x128xf32>
    %199 = arith.subf %0, %198 : vector<4x128xf32>
    %200 = arith.mulf %199, %199 : vector<4x128xf32>
    %cst_39 = arith.constant -1.25347233 : f32
    %201 = vector.broadcast %cst_39 : f32 to vector<4x128xf32>
    %202 = arith.mulf %201, %200 : vector<4x128xf32>
    %203 = math.exp %202 : vector<4x128xf32>
    %204 = vector.extract_strided_slice %1 {offsets = [16, 0], sizes = [1, 128], strides = [1, 1]} : vector<20x128xf32> to vector<1x128xf32>
    %205 = vector.shape_cast %204 : vector<1x128xf32> to vector<128xf32>
    %206 = vector.shape_cast %205 : vector<128xf32> to vector<1x128xf32>
    %207 = vector.broadcast %206 : vector<1x128xf32> to vector<4x128xf32>
    %208 = arith.mulf %203, %207 : vector<4x128xf32>
    %209 = arith.addf %161, %208 : vector<4x128xf32>
    %cst_40 = arith.constant 2.36842084 : f32
    %210 = vector.broadcast %cst_40 : f32 to vector<4x128xf32>
    %211 = arith.subf %0, %210 : vector<4x128xf32>
    %212 = arith.mulf %211, %211 : vector<4x128xf32>
    %cst_41 = arith.constant -1.25347233 : f32
    %213 = vector.broadcast %cst_41 : f32 to vector<4x128xf32>
    %214 = arith.mulf %213, %212 : vector<4x128xf32>
    %215 = math.exp %214 : vector<4x128xf32>
    %216 = vector.extract_strided_slice %1 {offsets = [17, 0], sizes = [1, 128], strides = [1, 1]} : vector<20x128xf32> to vector<1x128xf32>
    %217 = vector.shape_cast %216 : vector<1x128xf32> to vector<128xf32>
    %218 = vector.shape_cast %217 : vector<128xf32> to vector<1x128xf32>
    %219 = vector.broadcast %218 : vector<1x128xf32> to vector<4x128xf32>
    %220 = arith.mulf %215, %219 : vector<4x128xf32>
    %221 = arith.addf %173, %220 : vector<4x128xf32>
    %cst_42 = arith.constant 2.68421054 : f32
    %222 = vector.broadcast %cst_42 : f32 to vector<4x128xf32>
    %223 = arith.subf %0, %222 : vector<4x128xf32>
    %224 = arith.mulf %223, %223 : vector<4x128xf32>
    %cst_43 = arith.constant -1.25347233 : f32
    %225 = vector.broadcast %cst_43 : f32 to vector<4x128xf32>
    %226 = arith.mulf %225, %224 : vector<4x128xf32>
    %227 = math.exp %226 : vector<4x128xf32>
    %228 = vector.extract_strided_slice %1 {offsets = [18, 0], sizes = [1, 128], strides = [1, 1]} : vector<20x128xf32> to vector<1x128xf32>
    %229 = vector.shape_cast %228 : vector<1x128xf32> to vector<128xf32>
    %230 = vector.shape_cast %229 : vector<128xf32> to vector<1x128xf32>
    %231 = vector.broadcast %230 : vector<1x128xf32> to vector<4x128xf32>
    %232 = arith.mulf %227, %231 : vector<4x128xf32>
    %233 = arith.addf %185, %232 : vector<4x128xf32>
    %cst_44 = arith.constant 3.000000e+00 : f32
    %234 = vector.broadcast %cst_44 : f32 to vector<4x128xf32>
    %235 = arith.subf %0, %234 : vector<4x128xf32>
    %236 = arith.mulf %235, %235 : vector<4x128xf32>
    %cst_45 = arith.constant -1.25347233 : f32
    %237 = vector.broadcast %cst_45 : f32 to vector<4x128xf32>
    %238 = arith.mulf %237, %236 : vector<4x128xf32>
    %239 = math.exp %238 : vector<4x128xf32>
    %240 = vector.extract_strided_slice %1 {offsets = [19, 0], sizes = [1, 128], strides = [1, 1]} : vector<20x128xf32> to vector<1x128xf32>
    %241 = vector.shape_cast %240 : vector<1x128xf32> to vector<128xf32>
    %242 = vector.shape_cast %241 : vector<128xf32> to vector<1x128xf32>
    %243 = vector.broadcast %242 : vector<1x128xf32> to vector<4x128xf32>
    %244 = arith.mulf %239, %243 : vector<4x128xf32>
    %245 = arith.addf %197, %244 : vector<4x128xf32>
    %246 = arith.addf %209, %221 : vector<4x128xf32>
    %247 = arith.addf %246, %233 : vector<4x128xf32>
    %248 = arith.addf %247, %245 : vector<4x128xf32>
    %c0_46 = arith.constant 0 : index
    %c0_47 = arith.constant 0 : index
    %249 = vector.load %arg3[%c0_46, %c0_47] : memref<4x128xf32, #tpu.memory_space<vmem>>, vector<4x128xf32>
    tpu.vector_store %arg3[%c0_46, %c0_47], %248 {strides = array<i32>} : memref<4x128xf32, #tpu.memory_space<vmem>>, vector<4x128xf32>,
    return
  }
  func.func @transform_0(%arg0: i32) -> (i32, i32) {
    %c0_i32 = arith.constant 0 : i32
    %c0_i32_0 = arith.constant 0 : i32
    return %arg0, %c0_i32 : i32, i32
  }
  func.func @transform_1(%arg0: i32) -> (i32, i32) {
    %c0_i32 = arith.constant 0 : i32
    %c0_i32_0 = arith.constant 0 : i32
    %c0_i32_1 = arith.constant 0 : i32
    return %c0_i32, %c0_i32_0 : i32, i32
  }
  func.func @transform_2(%arg0: i32) -> (i32, i32) {
    %c0_i32 = arith.constant 0 : i32
    %c0_i32_0 = arith.constant 0 : i32
    return %arg0, %c0_i32 : i32, i32
  }
}

</mosaic_0001>

<bundles_post_ra>
// kernel: tpu_custom_call.1
= control target key start
LH: loop header
LB: loop body
LE: loop exit
PB: predicated region body
PF: predicated region fallthrough
CT: control target
= control target key end

     0   :  { %7 = vsyncpa [#allocation3], 0  ;;  %s452_s0 = inlined_call_operand.hbm [shape: f32[4,128], index: 0, kind: input, shape index: {}]   ;;  %s453_s1 = inlined_call_operand.hbm [shape: f32[20,128], index: 1, kind: input, shape index: {}]   ;;  %s454_s2 = inlined_call_operand.hbm [shape: f32[4,128], index: 2, kind: output, shape index: {}]  }
   0x1   :  { %8 = vsyncpa [#allocation6], 0 }
   0x2   :  { %9 = vsyncpa [#allocation4], 0  ;;  %s15_s11 = sshll.u32 %s452_s0, 4  ;;  %s371_s12 = smov [#allocation2]   ;;  %s16_s11 = int_to_ptr.hbm [resolvable:$true] %s15_s11 }
   0x3   :  { %s17_s13 = sshll.u32 %s371_s12, 4  ;;  %s25_s16 = sshll.u32 %s453_s1, 4  ;;  %s18_s13 = int_to_ptr.vmem [resolvable:$true] %s17_s13  ;;  %s26_s16 = int_to_ptr.hbm [resolvable:$true] %s25_s16 }
   0x4   :  { %20 = dma.hbm_to_vmem [thread:$0]  %s16_s11, 64, %s18_s13, [#allocation3]  }
   0x5   :  { %s372_s17 = smov [#allocation5]   ;;  %s373_s19 = smov 128  }
   0x6   :  { %s27_s18 = sshll.u32 %s372_s17, 4  ;;  %s374_s20 = smov 8   ;;  %s28_s18 = int_to_ptr.vmem [resolvable:$true] %s27_s18 }
   0x7   :  { %33 = dma.hbm_to_vmem [thread:$0]  %s26_s16, 384, %s28_s18, [#allocation6], %s373_s19, %s373_s19, %s374_s20  }
   0x8   :  { %365 = dma.done.wait [#allocation3], 64  }
   0x9   :  { %366 = vsyncadd [#allocation3], 4294967232 }
   0xa   :  { %367 = dma.done.wait [#allocation6], 384  }
   0xb   :  { %368 = vsyncadd [#allocation6], 4294966912  ;;  %v397_v0 = vld [vmem:[#allocation2] sm:$0xf]  ;;  %v406_v12 = vld [vmem:[#allocation5] sm:$0xff]  ;;  %s375_s0 = smov [#allocation7]  }
   0xc   :  { %v228_v1 = vadd.f32 3.0, %v397_v0  ;;  %v229_v2 = vadd.f32 2.6842105, %v397_v0  ;;  %v230_v3 = vadd.f32 2.368421, %v397_v0  ;;  %v51_v19 = vperm.slane %v406_v12, 0 }
   0xd   :  { %v231_v5 = vadd.f32 2.0526314, %v397_v0  ;;  %v232_v6 = vadd.f32 1.7368422, %v397_v0  ;;  %v233_v8 = vadd.f32 1.4210526, %v397_v0 }
   0xe   :  { %v47_v4 = vmul.f32 %v228_v1, %v228_v1  ;;  %v55_v7 = vmul.f32 %v229_v2, %v229_v2  ;;  %v63_v10 = vmul.f32 %v230_v3, %v230_v3  ;;  %v234_v11 = vadd.f32 1.1052632, %v397_v0  ;;  %v417_v44 = vld [vmem:[#allocation5 + $0x8] sm:$0xff]  ;;  %s215_s1 = sshll.u32 %s375_s0, 4  ;;  %s217_s23 = sshll.u32 %s454_s2, 4  ;;  %s216_s1 = int_to_ptr.vmem [resolvable:$true] %s215_s1  ;;  %s218_s23 = int_to_ptr.hbm [resolvable:$true] %s217_s23 }
   0xf   :  { %v79_v9 = vmul.f32 %v232_v6, %v232_v6  ;;  %v71_v14 = vmul.f32 %v231_v5, %v231_v5  ;;  %v87_v16 = vmul.f32 %v233_v8, %v233_v8  ;;  %v235_v18 = vadd.f32 0.78947365, %v397_v0 }
  0x10   :  { %v48_v13 = vmul.f32 -1.2534723, %v47_v4  ;;  %v56_v15 = vmul.f32 -1.2534723, %v55_v7  ;;  %v59_v20 = vperm.slane %v406_v12, 1  ;;  %v95_v22 = vmul.f32 %v234_v11, %v234_v11 }
  0x11   :  { %v80_v17 = vmul.f32 -1.2534723, %v79_v9  ;;  %v64_v21 = vmul.f32 -1.2534723, %v63_v10  ;;  %v72_v24 = vmul.f32 -1.2534723, %v71_v14  ;;  %v103_v28 = vmul.f32 %v235_v18, %v235_v18 }
  0x12   :  { %v49_v23 = vmul.f32 1.442695, %v48_v13  ;;  %v236_v25 = vadd.f32 0.4736843, %v397_v0  ;;  %v57_v26 = vmul.f32 1.442695, %v56_v15 }
  0x13   :  { %v88_v27 = vmul.f32 -1.2534723, %v87_v16  ;;  %v237_v29 = vadd.f32 0.15789485, %v397_v0  ;;  %v67_v30 = vperm.slane %v406_v12, 2  ;;  %v75_v41 = vperm.slane %v406_v12, 3 }
  0x14   :  { %v81_v31 = vmul.f32 1.442695, %v80_v17  ;;  %v111_v32 = vmul.f32 %v236_v25, %v236_v25  ;;  %v238_v33 = vadd.f32 -0.15789473, %v397_v0  ;;  %v65_v34 = vmul.f32 1.442695, %v64_v21 }
  0x15   :  { %v96_v35 = vmul.f32 -1.2534723, %v95_v22  ;;  %v119_v36 = vmul.f32 %v237_v29, %v237_v29  ;;  %v239_v37 = vadd.f32 -0.4736842, %v397_v0  ;;  %253 = vpow2.f32 %v49_v23 }
  0x16   :  { %v73_v38 = vmul.f32 1.442695, %v72_v24  ;;  %v112_v39 = vmul.f32 -1.2534723, %v111_v32  ;;  %v127_v40 = vmul.f32 %v238_v33, %v238_v33  ;;  %255 = vpow2.f32 %v57_v26 }
  0x17   :  { %v89_v42 = vmul.f32 1.442695, %v88_v27  ;;  %v104_v43 = vmul.f32 -1.2534723, %v103_v28  ;;  %257 = vpow2.f32 %v81_v31  ;;  %v83_v45 = vperm.slane %v406_v12, 4 }
  0x18   :  { %v91_v46 = vperm.slane %v406_v12, 5  ;;  %v135_v47 = vmul.f32 %v239_v37, %v239_v37  ;;  %259 = vpow2.f32 %v65_v34  ;;  %v97_v48 = vmul.f32 1.442695, %v96_v35 }
  0x19   :  { %v120_v49 = vmul.f32 -1.2534723, %v119_v36  ;;  %v240_v50 = vadd.f32 -0.78947353, %v397_v0  ;;  %261 = vpow2.f32 %v73_v38  ;;  %v99_v51 = vperm.slane %v406_v12, 6 }
  0x1a   :  { %v113_v52 = vmul.f32 1.442695, %v112_v39  ;;  %v128_v53 = vmul.f32 -1.2534723, %v127_v40  ;;  %263 = vpow2.f32 %v89_v42  ;;  %v105_v54 = vmul.f32 1.442695, %v104_v43 }
  0x1b   :  { %v107_v55 = vperm.slane %v406_v12, 7  ;;  %v143_v56 = vmul.f32 %v240_v50, %v240_v50  ;;  %v254_v57 = vpop.eup %253  ;;  %v115_v58 = vperm.slane %v417_v44, 0  ;;  %v123_v59 = vperm.slane %v417_v44, 1  ;;  %v45_v50 = vld [vmem:[#allocation5 + $0x10] sm:$0xf] }
  0x1c   :  { %v136_v60 = vmul.f32 -1.2534723, %v135_v47  ;;  %v241_v61 = vadd.f32 -1.1052631, %v397_v0  ;;  %v256_v62 = vpop.eup %255  ;;  %265 = vpow2.f32 %v97_v48  ;;  %v121_v63 = vmul.f32 1.442695, %v120_v49 }
  0x1d   :  { %v131_v1 = vperm.slane %v417_v44, 2  ;;  %v144_v2 = vmul.f32 -1.2534723, %v143_v56  ;;  %v258_v3 = vpop.eup %257  ;;  %267 = vpow2.f32 %v113_v52  ;;  %v129_v4 = vmul.f32 1.442695, %v128_v53 }
  0x1e   :  { %v151_v5 = vmul.f32 %v241_v61, %v241_v61  ;;  %v242_v6 = vadd.f32 -1.4210525, %v397_v0  ;;  %v260_v7 = vpop.eup %259  ;;  %v52_v8 = vmul.f32 %v254_v57, %v51_v19  ;;  %269 = vpow2.f32 %v105_v54 }
  0x1f   :  { %v145_v9 = vmul.f32 1.442695, %v144_v2  ;;  %v243_v10 = vadd.f32 -1.7368422, %v397_v0  ;;  %v262_v11 = vpop.eup %261  ;;  %v137_v13 = vmul.f32 1.442695, %v136_v60  ;;  %v84_v18 = vmul.f32 %v258_v3, %v83_v45 }
  0x20   :  { %v152_v14 = vmul.f32 -1.2534723, %v151_v5  ;;  %v159_v15 = vmul.f32 %v242_v6, %v242_v6  ;;  %v244_v16 = vadd.f32 -2.0526314, %v397_v0  ;;  %v264_v17 = vpop.eup %263  ;;  %271 = vpow2.f32 %v121_v63 }
  0x21   :  { %v139_v21 = vperm.slane %v417_v44, 3  ;;  %v167_v22 = vmul.f32 %v243_v10, %v243_v10  ;;  %273 = vpow2.f32 %v129_v4  ;;  %v60_v26 = vmul.f32 %v256_v62, %v59_v20 }
  0x22   :  { %v153_v23 = vmul.f32 1.442695, %v152_v14  ;;  %v160_v24 = vmul.f32 -1.2534723, %v159_v15  ;;  %v175_v19 = vmul.f32 %v244_v16, %v244_v16  ;;  %v266_v25 = vpop.eup %265  ;;  %v68_v27 = vmul.f32 %v260_v7, %v67_v30 }
  0x23   :  { %275 = vpow2.f32 %v145_v9  ;;  %v168_v28 = vmul.f32 -1.2534723, %v167_v22  ;;  %v268_v29 = vpop.eup %267  ;;  %v76_v31 = vmul.f32 %v262_v11, %v75_v41  ;;  %v92_v32 = vmul.f32 %v264_v17, %v91_v46 }
  0x24   :  { %277 = vpow2.f32 %v137_v13  ;;  %v161_v33 = vmul.f32 1.442695, %v160_v24  ;;  %v270_v34 = vpop.eup %269  ;;  %v176_v36 = vmul.f32 -1.2534723, %v175_v19  ;;  %v245_v37 = vadd.f32 -2.3684208, %v397_v0 }
  0x25   :  { %279 = vpow2.f32 %v153_v23  ;;  %v169_v35 = vmul.f32 1.442695, %v168_v28  ;;  %v85_v38 = vadd.f32 %v84_v18, %v52_v8  ;;  %v147_v39 = vperm.slane %v417_v44, 4 }
  0x26   :  { %281 = vpow2.f32 %v161_v33  ;;  %v246_v20 = vadd.f32 -2.6842105, %v397_v0  ;;  %v272_v30 = vpop.eup %271  ;;  %v100_v40 = vmul.f32 %v266_v25, %v99_v51  ;;  %v116_v42 = vmul.f32 %v268_v29, %v115_v58 }
  0x27   :  { %v177_v43 = vmul.f32 1.442695, %v176_v36  ;;  %v183_v41 = vmul.f32 %v245_v37, %v245_v37  ;;  %v274_v45 = vpop.eup %273  ;;  %v155_v46 = vperm.slane %v417_v44, 5  ;;  %283 = vpow2.f32 %v169_v35 }
  0x28   :  { %v191_v47 = vmul.f32 %v246_v20, %v246_v20  ;;  %v247_v48 = vadd.f32 -3.0, %v397_v0  ;;  %v93_v52 = vadd.f32 %v92_v32, %v60_v26  ;;  %v108_v53 = vmul.f32 %v270_v34, %v107_v55 }
  0x29   :  { %v276_v49 = vpop.eup %275  ;;  %285 = vpow2.f32 %v177_v43  ;;  %v184_v54 = vmul.f32 -1.2534723, %v183_v41  ;;  %v124_v51 = vmul.f32 %v272_v30, %v123_v59  ;;  %v163_v57 = vperm.slane %v417_v44, 6 }
  0x2a   :  { %v278_v56 = vpop.eup %277  ;;  %v192_v58 = vmul.f32 -1.2534723, %v191_v47  ;;  %v199_v60 = vmul.f32 %v247_v48, %v247_v48  ;;  %v101_v62 = vadd.f32 %v100_v40, %v68_v27  ;;  %v117_v63 = vadd.f32 %v116_v42, %v85_v38 }
  0x2b   :  { %v280_v61 = vpop.eup %279  ;;  %v132_v0 = vmul.f32 %v274_v45, %v131_v1  ;;  %v185_v2 = vmul.f32 1.442695, %v184_v54  ;;  %v148_v12 = vmul.f32 %v276_v49, %v147_v39  ;;  %v179_v55 = vperm.slane %v45_v50, 0 }
  0x2c   :  { %v282_v3 = vpop.eup %281  ;;  %v193_v4 = vmul.f32 1.442695, %v192_v58  ;;  %v200_v5 = vmul.f32 -1.2534723, %v199_v60  ;;  %v109_v6 = vadd.f32 %v108_v53, %v76_v31  ;;  %v140_v7 = vmul.f32 %v278_v56, %v139_v21 }
  0x2d   :  { %v171_v59 = vperm.slane %v417_v44, 7  ;;  %287 = vpow2.f32 %v185_v2  ;;  %v284_v8 = vpop.eup %283  ;;  %v125_v9 = vadd.f32 %v124_v51, %v93_v52  ;;  %v156_v10 = vmul.f32 %v280_v61, %v155_v46 }
  0x2e   :  { %289 = vpow2.f32 %v193_v4  ;;  %v201_v11 = vmul.f32 1.442695, %v200_v5  ;;  %v133_v14 = vadd.f32 %v132_v0, %v101_v62  ;;  %v164_v15 = vmul.f32 %v282_v3, %v163_v57 }
  0x2f   :  { %v286_v13 = vpop.eup %285  ;;  %v149_v1 = vadd.f32 %v148_v12, %v117_v63  ;;  %v187_v17 = vperm.slane %v45_v50, 1  ;;  %v141_v18 = vadd.f32 %v140_v7, %v109_v6  ;;  %v172_v22 = vmul.f32 %v284_v8, %v171_v59 }
  0x30   :  { %v180_v16 = vmul.f32 %v286_v13, %v179_v55  ;;  %291 = vpow2.f32 %v201_v11  ;;  %v195_v23 = vperm.slane %v45_v50, 2  ;;  %v157_v24 = vadd.f32 %v156_v10, %v125_v9 }
  0x31   :  { %v165_v19 = vadd.f32 %v164_v15, %v133_v14  ;;  %v203_v44 = vperm.slane %v45_v50, 3  ;;  %v173_v28 = vadd.f32 %v172_v22, %v141_v18 }
  0x32   :  { %v181_v26 = vadd.f32 %v180_v16, %v149_v1 }
  0x33   :  { %v288_v21 = vpop.eup %287 }
  0x34   :  { %v290_v25 = vpop.eup %289  ;;  %v188_v27 = vmul.f32 %v288_v21, %v187_v17 }
  0x35   :  { %v196_v29 = vmul.f32 %v290_v25, %v195_v23 }
  0x36   :  { %v292_v31 = vpop.eup %291  ;;  %v189_v32 = vadd.f32 %v188_v27, %v157_v24 }
  0x37   :  { %v197_v33 = vadd.f32 %v196_v29, %v165_v19  ;;  %v204_v34 = vmul.f32 %v292_v31, %v203_v44 }
  0x38   :  { %v206_v35 = vadd.f32 %v189_v32, %v181_v26 }
  0x39   :  { %v205_v36 = vadd.f32 %v204_v34, %v173_v28 }
  0x3a   :  { %v207_v37 = vadd.f32 %v206_v35, %v197_v33 }
  0x3c   :  { %v208_v38 = vadd.f32 %v207_v37, %v205_v36 }
  0x3e   :  { %209 = vst [vmem:[#allocation7] sm:$0xf] %v208_v38 }
  0x3f   :  { %220 = dma.vmem_to_hbm [thread:$0]  %s216_s1, 64, %s218_s23, [#allocation4]  }
  0x40   :  { %369 = dma.done.wait [#allocation4], 64  }
  0x41   :  { %370 = vsyncadd [#allocation4], 4294967232 }
  0x42   :  { %225 = vsyncpa [#allocation3], 1 }
  0x43   :  { %226 = vsyncpa [#allocation6], 1 }
  0x44   :  { %227 = vsyncpa [#allocation4], 1 }

</bundles_post_ra>
